<compile_context>
chip_gen: v6e
topology: v6e:2x2x1
jax: 0.10.0
libtpu: 0.0.40
codegen_flags: <defaults>
</compile_context>

<pallas_src>
import jax
import jax.numpy as jnp
from jax.experimental import pallas as pl
from jax.experimental.pallas import tpu as pltpu

_LANES = 128
_SUBLANES = 8
_MAX_BLOCK_ROWS = 8192      # 8192 rows x 128 lanes x 4 B = 4 MiB per output block
_PALLAS_MIN_N = 16 * 1024   # below this, jnp.full (fusible, zero-launch) is strictly faster


def _round_up(v: int, m: int) -> int:
    return pl.cdiv(v, m) * m


def _fill_kernel(scale_ref, out_ref):
    # scale_ref: SMEM (1,) f32 holding exp(variance * 10), precomputed in JAX.
    # out_ref:   VMEM (block_rows, 128) f32 -- pure splat-store, no VALU/EUP work.
    out_ref[...] = jnp.full(out_ref.shape, scale_ref[0], out_ref.dtype)


def single_variance_forward(
    x: jax.Array,
    variance: jax.Array,
    *,
    force_pallas: bool | None = None,
    return_lane_dense: bool = False,
) -> jax.Array:
    """Pallas equivalent of SingleVarianceNetwork.forward(x).

    Returns (N, 1) f32 by default; with return_lane_dense=True returns the
    lane-dense (round_up(ceil(N/128), 8), 128) slab so downstream kernels can
    consume it without the (N, 1) layout-padding re-materialization.
    """
    n = x.shape[0]
    # Hoisted scalar math (computed once, fused by XLA).  No clip -> may be inf.
    scale = jnp.exp(variance.astype(jnp.float32) * 10.0)  # shape (1,)

    use_pallas = force_pallas if force_pallas is not None else (n >= _PALLAS_MIN_N)
    if not use_pallas:
        # Fusible constant broadcast: XLA folds this into the consumer.
        return jnp.full((n, 1), scale[0], dtype=jnp.float32)

    # Lane-dense slab: flatten the logical (N, 1) column into (rows, 128),
    # rounded up to 8 sublanes only (<= 3.5 KiB of tail padding, never a block).
    rows = pl.cdiv(n, _LANES)
    rows_padded = _round_up(rows, _SUBLANES)

    # Balanced blocks: <= ~4 MiB each, and >= 2 blocks for large N so the
    # "parallel" axis can shard across both v7x TensorCores.
    num_blocks = max(2, pl.cdiv(rows_padded, _MAX_BLOCK_ROWS))
    block_rows = _round_up(pl.cdiv(rows_padded, num_blocks), _SUBLANES)
    num_blocks = pl.cdiv(rows_padded, block_rows)  # re-derive after rounding

    filled = pl.pallas_call(
        _fill_kernel,
        out_shape=jax.ShapeDtypeStruct((rows_padded, _LANES), jnp.float32),
        grid=(num_blocks,),
        in_specs=[pl.BlockSpec(memory_space=pltpu.MemorySpace.SMEM)],
        out_specs=pl.BlockSpec((block_rows, _LANES), lambda i: (i, 0)),
        compiler_params=pltpu.CompilerParams(
            dimension_semantics=("parallel",)),
    )(scale)

    if return_lane_dense:
        return filled
    if rows_padded * _LANES == n:
        # Exact fit: reshape is pure metadata, no slice copy.
        return filled.reshape(n, 1)
    # General case: slice off the padded tail (extra HBM pass; prefer the
    # lane-dense slab or the small-N jnp.full path when possible).
    return filled.reshape(-1)[:n].reshape(n, 1)


def get_variance(variance: jax.Array) -> jax.Array:
    """Plain-JAX equivalent of SingleVarianceNetwork.get_variance().

    Three scalar ops; a pallas_call would be pure launch overhead and would
    block XLA fusion into callers.
    """
    return jnp.clip(jnp.exp(variance.astype(jnp.float32) * 10.0), 1e-06, 1e06)


if __name__ == "__main__":
    key = jax.random.PRNGKey(0)

    # Deterministic parameter init, mirroring nn.Parameter(init_val * torch.ones(1)).
    init_val = 0.3
    variance_param = jnp.full((1,), init_val, dtype=jnp.float32)
    expected_scale = jnp.exp(variance_param * 10.0)

    # 1) Small N, default dispatch -> fusible jnp.full path.
    x = jax.random.normal(key, (8, 3), dtype=jnp.float32)
    out = jax.block_until_ready(single_variance_forward(x, variance_param))
    ref = jnp.ones((8, 1), jnp.float32) * expected_scale
    assert out.shape == (8, 1)
    assert jnp.allclose(out, ref, rtol=1e-6, atol=1e-6)

    # 2) Small N, forced Pallas path (ragged tail + slice plumbing).
    x2 = jax.random.normal(key, (300, 3), dtype=jnp.float32)
    out2 = jax.block_until_ready(
        single_variance_forward(x2, variance_param, force_pallas=True))
    ref2 = jnp.ones((300, 1), jnp.float32) * expected_scale
    assert out2.shape == (300, 1)
    assert jnp.allclose(out2, ref2, rtol=1e-6, atol=1e-6)

    # 3) Exact-fit N (n % 1024 == 0), forced Pallas -> metadata-only reshape.
    x3 = jax.random.normal(key, (1024, 3), dtype=jnp.float32)
    out3 = jax.block_until_ready(
        single_variance_forward(x3, variance_param, force_pallas=True))
    ref3 = jnp.ones((1024, 1), jnp.float32) * expected_scale
    assert out3.shape == (1024, 1)
    assert jnp.allclose(out3, ref3, rtol=1e-6, atol=1e-6)

    # 4) Above the threshold, default dispatch -> Pallas, 2 balanced blocks.
    x4 = jax.random.normal(key, (20000, 3), dtype=jnp.float32)
    out4 = jax.block_until_ready(single_variance_forward(x4, variance_param))
    assert out4.shape == (20000, 1)
    assert jnp.allclose(out4, expected_scale[0], rtol=1e-6, atol=1e-6)

    # 5) Lane-dense slab consumption (no (N, 1) re-materialization).
    slab = jax.block_until_ready(
        single_variance_forward(x2, variance_param, force_pallas=True,
                                return_lane_dense=True))
    assert slab.shape == (8, 128)  # round_up(ceil(300/128), 8) = 8 rows
    assert jnp.allclose(slab, expected_scale[0], rtol=1e-6, atol=1e-6)

    # 6) get_variance (plain JAX, clipped).
    gv = jax.block_until_ready(get_variance(variance_param))
    assert jnp.allclose(gv, jnp.clip(expected_scale, 1e-06, 1e06))

    print("KERNEL_OK")
</pallas_src>

<mosaic_0001>
module attributes {stable_mosaic.version = 11 : i64} {
  func.func @_fill_kernel(%arg0: i32, %arg1: memref<1xf32, #tpu.memory_space<smem>>, %arg2: memref<8x128xf32, #tpu.memory_space<vmem>>) attributes {dimension_semantics = [#tpu.dimension_semantics<parallel>], iteration_bounds = array<i64: 1>, scalar_prefetch = 0 : i64, scratch_operands = 0 : i64, tpu.core_type = #tpu.core_type<tc>, window_params = [{transform_indices = @transform_0, window_bounds = array<i64: 1>}, {transform_indices = @transform_1, window_bounds = array<i64: 8, 128>}]} {
    %c0 = arith.constant 0 : index
    %0 = memref.load %arg1[%c0] : memref<1xf32, #tpu.memory_space<smem>>
    %1 = vector.broadcast %0 : f32 to vector<8x128xf32>
    %c0_0 = arith.constant 0 : index
    %c0_1 = arith.constant 0 : index
    %2 = vector.load %arg2[%c0_0, %c0_1] : memref<8x128xf32, #tpu.memory_space<vmem>>, vector<8x128xf32>
    tpu.vector_store %arg2[%c0_0, %c0_1], %1 {strides = array<i32>} : memref<8x128xf32, #tpu.memory_space<vmem>>, vector<8x128xf32>,
    return
  }
  func.func @transform_0(%arg0: i32) -> i32 {
    %c0_i32 = arith.constant 0 : i32
    %c0_i32_0 = arith.constant 0 : i32
    return %c0_i32 : i32
  }
  func.func @transform_1(%arg0: i32) -> (i32, i32) {
    %c0_i32 = arith.constant 0 : i32
    %c0_i32_0 = arith.constant 0 : i32
    return %arg0, %c0_i32 : i32, i32
  }
}

</mosaic_0001>

<bundles_post_ra>
// kernel: tpu_custom_call.1
= control target key start
LH: loop header
LB: loop body
LE: loop exit
PB: predicated region body
PF: predicated region fallthrough
CT: control target
= control target key end

     0   :  { %s67_s0 = inlined_call_operand.<no memory space> [shape: f32[1], index: 0, kind: input, shape index: {}]   ;;  %s68_s1 = inlined_call_operand.hbm [shape: f32[8,128], index: 1, kind: output, shape index: {}]  }
   0x1   :  { %v11_v0 = vstv %s67_s0 }
   0x2   :  { %7 = vsyncpa [#allocation4], 0  ;;  %12 = vst [vmem:[#allocation3] sm:$0xff] %v11_v0  ;;  %s50_s8 = smov [#allocation3]  }
   0x3   :  { %s19_s9 = sshll.u32 %s50_s8, 4  ;;  %s20_s9 = int_to_ptr.vmem [resolvable:$true] %s19_s9 }
   0x4   :  { %s28_s10 = scalar_lea.vmem %s20_s9, 128  ;;  %p33_p1 = scmp.lt.s32.totalorder %s20_s9, %s20_s9 }
   0x5   :  { %p29_p0 = scmp.ne.s32.totalorder %s20_s9, %s28_s10  ;;  %p34_p2 = scmp.lt.s32.totalorder %s28_s10, %s28_s10 }
   0x7   :  { %p35_p3 = por %p34_p2, %p33_p1 }
   0x9   :  { %p36_p4 = pnand %p35_p3, %p29_p0 }
   0xb   :  { %39 = shalt.err (!%p36_p4)
}
   0xc   :  { %22 = dma.vmem_to_hbm [thread:$0]  %s20_s9, 128, %s68_s1, [#allocation4]  }
   0xd   :  { %48 = dma.done.wait [#allocation4], 128  }
   0xe   :  { %49 = vsyncadd [#allocation4], 4294967168 }
   0xf   :  { %26 = vsyncpa [#allocation4], 1 }

</bundles_post_ra>
